<compile_context>
chip_gen: v6e
topology: v6e:2x2x1
jax: 0.10.0
libtpu: 0.0.40
codegen_flags: <defaults>
</compile_context>

<pallas_src>
import functools

import jax
import jax.numpy as jnp
from jax.experimental import pallas as pl
from jax.experimental.pallas import tpu as pltpu


def _bridge_prob_kernel(logits_ref, la_ref, lb_ref, lam_ref,
                        out_ori_ref, out_bri_ref, acc_o_ref, acc_b_ref,
                        *, one_minus_eps, eps_over_c, rows_per_chunk,
                        tile_rows, inv_n_ori, inv_n_mix):
    """Grid = (device_num*3 chunks, row-tiles per chunk). Chunk order per device is
    [source, mixed, target]; mixed rows (chunk % 3 == 1) feed the bridge loss."""
    g = pl.program_id(0)          # chunk index
    r = pl.program_id(1)          # row-tile index within the chunk

    @pl.when(jnp.logical_and(g == 0, r == 0))
    def _init():
        acc_o_ref[...] = jnp.zeros_like(acc_o_ref)
        acc_b_ref[...] = jnp.zeros_like(acc_b_ref)

    x = logits_ref[...].astype(jnp.float32)                  # (tr, C)
    tr, c = x.shape

    # Numerically stable log-softmax along the class (lane) axis.
    m = jnp.max(x, axis=1, keepdims=True)                    # (tr, 1)
    xs = x - m
    lse = jnp.log(jnp.sum(jnp.exp(xs), axis=1, keepdims=True))
    logp = xs - lse                                          # (tr, C)
    sum_logp = jnp.sum(logp, axis=1, keepdims=True)          # (tr, 1)

    # Slice the resident per-row metadata for this tile (global row offset).
    row0 = pl.multiple_of(g * rows_per_chunk + r * tile_rows, tile_rows)
    la = la_ref[pl.ds(row0, tile_rows), :]                   # (tr, 1) int32
    lb = lb_ref[pl.ds(row0, tile_rows), :]                   # (tr, 1) int32
    lam = lam_ref[pl.ds(row0, tile_rows), :]                 # (tr, 1) f32

    # Gather logp at the label columns via on-the-fly one-hot masks (pure VPU work).
    col = jax.lax.broadcasted_iota(jnp.int32, (tr, c), 1)
    lp_a = jnp.sum(jnp.where(col == la, logp, 0.0), axis=1, keepdims=True)
    lp_b = jnp.sum(jnp.where(col == lb, logp, 0.0), axis=1, keepdims=True)

    row_loss = (-one_minus_eps * (lam * lp_a + (1.0 - lam) * lp_b)
                - eps_over_c * sum_logp)                     # (tr, 1)

    is_bridge = (g % 3) == 1

    @pl.when(is_bridge)
    def _acc_bridge():
        acc_b_ref[...] += row_loss

    @pl.when(jnp.logical_not(is_bridge))
    def _acc_ori():
        acc_o_ref[...] += row_loss

    last = jnp.logical_and(g == pl.num_programs(0) - 1,
                           r == pl.num_programs(1) - 1)

    @pl.when(last)
    def _finalize():
        out_ori_ref[...] = jnp.sum(acc_o_ref[...], axis=0, keepdims=True) * inv_n_ori
        out_bri_ref[...] = jnp.sum(acc_b_ref[...], axis=0, keepdims=True) * inv_n_mix


def _choose_tile_rows(n_rows, n_cols, itemsize, budget_bytes=4 * 1024 * 1024):
    """Whole chunk if it fits the budget; else the largest multiple-of-8 divisor of
    n_rows whose tile stays under the budget (fallback: whole chunk)."""
    if n_rows * n_cols * itemsize <= budget_bytes:
        return n_rows
    max_rows = max(8, budget_bytes // (n_cols * itemsize))
    best = None
    r = 8
    while r <= min(max_rows, n_rows):
        if n_rows % r == 0:
            best = r
        r += 8
    return best if best is not None else n_rows


def bridge_prob_loss(inputs, targets, lam, *, num_classes, epsilon=0.1,
                     device_num=1):
    """Forward pass of BridgeProbLoss.

    inputs:  (device_num*3*B, C) logits, per device laid out [source; mixed; target]
    targets: (device_num*2*B,) int labels, per device laid out [source; target]
    lam:     (device_num*B,) or (device_num*B, 1) blend weights for the mixed rows
    Returns (loss_ori, loss_bridge_prob) as float32 scalars.
    """
    total, c = inputs.shape
    per_dev = total // device_num
    b = per_dev // 3
    n_ori = 2 * device_num * b
    n_mix = device_num * b

    # Free view: chunk blocks in order [d0: s, m, t, d1: s, m, t, ...].
    x3 = inputs.reshape(device_num * 3, b, c)

    # Per-row metadata in the SAME global row order as x3's rows.
    t2 = targets.astype(jnp.int32).reshape(device_num, 2, b)
    t_s, t_t = t2[:, 0], t2[:, 1]                               # (device_num, b)
    lam_d = lam.astype(jnp.float32).reshape(device_num, b)
    ones = jnp.ones_like(lam_d)

    la_all = jnp.stack([t_s, t_s, t_t], axis=1).reshape(total, 1)    # label A per row
    lb_all = jnp.stack([t_s, t_t, t_t], axis=1).reshape(total, 1)    # label B per row
    lam_all = jnp.stack([ones, lam_d, ones], axis=1).reshape(total, 1)

    tile_rows = _choose_tile_rows(b, c, inputs.dtype.itemsize)
    grid = (device_num * 3, b // tile_rows)

    tile_bytes = tile_rows * c * max(inputs.dtype.itemsize, 4)
    vmem_limit = int(min(64 * 1024 * 1024, max(32 * 1024 * 1024, 6 * tile_bytes)))

    kernel = functools.partial(
        _bridge_prob_kernel,
        one_minus_eps=float(1.0 - epsilon),
        eps_over_c=float(epsilon) / float(num_classes),
        rows_per_chunk=int(b),
        tile_rows=int(tile_rows),
        inv_n_ori=1.0 / float(n_ori),
        inv_n_mix=1.0 / float(n_mix),
    )

    resident = lambda: pl.BlockSpec((total, 1), lambda g, r: (0, 0))

    out_ori, out_bri = pl.pallas_call(
        kernel,
        out_shape=(jax.ShapeDtypeStruct((1, 1), jnp.float32),
                   jax.ShapeDtypeStruct((1, 1), jnp.float32)),
        grid_spec=pltpu.PrefetchScalarGridSpec(
            num_scalar_prefetch=0,
            grid=grid,
            in_specs=[
                # logits: one (tile_rows, C) tile per grid step, read in place.
                pl.BlockSpec((None, tile_rows, c), lambda g, r: (g, r, 0)),
                resident(),   # labels A
                resident(),   # labels B
                resident(),   # lam
            ],
            out_specs=(pl.BlockSpec((1, 1), lambda g, r: (0, 0)),
                       pl.BlockSpec((1, 1), lambda g, r: (0, 0))),
            scratch_shapes=[pltpu.VMEM((tile_rows, 1), jnp.float32),
                            pltpu.VMEM((tile_rows, 1), jnp.float32)],
        ),
        compiler_params=pltpu.CompilerParams(
            dimension_semantics=("arbitrary", "arbitrary"),  # both axes feed the accumulators
            vmem_limit_bytes=vmem_limit,
        ),
    )(x3, la_all, lb_all, lam_all)
    return out_ori[0, 0], out_bri[0, 0]


def _reference(inputs, targets, lam, num_classes, epsilon, device_num):
    """Pure-JAX transcription of the PyTorch forward for validation."""
    c = inputs.shape[-1]
    x = inputs.reshape(device_num, -1, c)
    b = x.shape[1] // 3
    x_s, x_m, x_t = x[:, :b], x[:, b:2 * b], x[:, 2 * b:]
    inputs_ori = jnp.concatenate([x_s, x_t], axis=1).reshape(-1, c)
    inputs_mixed = x_m.reshape(-1, c)
    logp_ori = jax.nn.log_softmax(inputs_ori, axis=1)
    logp_mix = jax.nn.log_softmax(inputs_mixed, axis=1)

    onehot = jax.nn.one_hot(targets.reshape(-1), c, dtype=jnp.float32)
    ov = onehot.reshape(device_num, -1, c)
    hb = ov.shape[1] // 2
    t_s = ov[:, :hb].reshape(-1, c)
    t_t = ov[:, hb:].reshape(-1, c)

    soft = (1.0 - epsilon) * onehot + epsilon / num_classes
    lam_ = lam.reshape(-1, 1).astype(jnp.float32)
    soft_m = lam_ * t_s + (1.0 - lam_) * t_t
    soft_m = (1.0 - epsilon) * soft_m + epsilon / num_classes

    loss_ori = jnp.sum(jnp.mean(-soft * logp_ori, axis=0))
    loss_bridge = jnp.sum(jnp.mean(-soft_m * logp_mix, axis=0))
    return loss_ori, loss_bridge


if __name__ == "__main__":
    keys = jax.random.split(jax.random.PRNGKey(0), 6)
    epsilon = 0.1
    num_classes = 256            # class dim kept a multiple of 128 (lane-dense)

    # --- config 1: device_num = 1, B = 8 -> inputs (24, 256) ---
    device_num, b = 1, 8
    total = device_num * 3 * b
    inputs = jax.random.normal(keys[0], (total, num_classes), dtype=jnp.float32)
    targets = jax.random.randint(keys[1], (device_num * 2 * b,), 0, num_classes,
                                 dtype=jnp.int32)
    lam = jax.random.uniform(keys[2], (device_num * b, 1), dtype=jnp.float32)

    loss_ori, loss_bridge = bridge_prob_loss(
        inputs, targets, lam, num_classes=num_classes,
        epsilon=epsilon, device_num=device_num)
    jax.block_until_ready((loss_ori, loss_bridge))

    ref_ori, ref_bridge = _reference(inputs, targets, lam, num_classes,
                                     epsilon, device_num)
    assert jnp.allclose(loss_ori, ref_ori, rtol=1e-4, atol=1e-4), (loss_ori, ref_ori)
    assert jnp.allclose(loss_bridge, ref_bridge, rtol=1e-4, atol=1e-4), (loss_bridge, ref_bridge)

    # --- config 2: device_num = 2 (exercises the per-device interleave) ---
    device_num2, b2 = 2, 8
    total2 = device_num2 * 3 * b2
    inputs2 = jax.random.normal(keys[3], (total2, num_classes), dtype=jnp.float32)
    targets2 = jax.random.randint(keys[4], (device_num2 * 2 * b2,), 0, num_classes,
                                  dtype=jnp.int32)
    lam2 = jax.random.uniform(keys[5], (device_num2 * b2, 1), dtype=jnp.float32)

    l1, l2 = bridge_prob_loss(inputs2, targets2, lam2, num_classes=num_classes,
                              epsilon=epsilon, device_num=device_num2)
    jax.block_until_ready((l1, l2))
    r1, r2 = _reference(inputs2, targets2, lam2, num_classes, epsilon, device_num2)
    assert jnp.allclose(l1, r1, rtol=1e-4, atol=1e-4), (l1, r1)
    assert jnp.allclose(l2, r2, rtol=1e-4, atol=1e-4), (l2, r2)

    print("KERNEL_OK")
</pallas_src>

<mosaic_0001>
module attributes {stable_mosaic.version = 11 : i64} {
  func.func @_bridge_prob_kernel(%arg0: i32, %arg1: i32, %arg2: memref<1x8x256xf32, #tpu.memory_space<vmem>>, %arg3: memref<24x1xi32, #tpu.memory_space<vmem>>, %arg4: memref<24x1xi32, #tpu.memory_space<vmem>>, %arg5: memref<24x1xf32, #tpu.memory_space<vmem>>, %arg6: memref<1x1xf32, #tpu.memory_space<vmem>>, %arg7: memref<1x1xf32, #tpu.memory_space<vmem>>, %arg8: memref<8x1xf32, #tpu.memory_space<vmem>>, %arg9: memref<8x1xf32, #tpu.memory_space<vmem>>) attributes {dimension_semantics = [#tpu.dimension_semantics<arbitrary>, #tpu.dimension_semantics<arbitrary>], iteration_bounds = array<i64: 3, 1>, scalar_prefetch = 0 : i64, scratch_operands = 2 : i64, tpu.core_type = #tpu.core_type<tc>, window_params = [{transform_indices = @transform_0, window_bounds = array<i64: 1, 8, 256>}, {pipeline_mode = #tpu.pipeline_mode<synchronous>, transform_indices = @transform_1, window_bounds = array<i64: 24, 1>}, {pipeline_mode = #tpu.pipeline_mode<synchronous>, transform_indices = @transform_2, window_bounds = array<i64: 24, 1>}, {pipeline_mode = #tpu.pipeline_mode<synchronous>, transform_indices = @transform_3, window_bounds = array<i64: 24, 1>}, {pipeline_mode = #tpu.pipeline_mode<synchronous>, transform_indices = @transform_4, window_bounds = array<i64: 1, 1>}, {pipeline_mode = #tpu.pipeline_mode<synchronous>, transform_indices = @transform_5, window_bounds = array<i64: 1, 1>}]} {
    %c0_i32 = arith.constant 0 : i32
    %0 = arith.cmpi eq, %arg0, %c0_i32 : i32
    %c0_i32_0 = arith.constant 0 : i32
    %1 = arith.cmpi eq, %arg1, %c0_i32_0 : i32
    %2 = arith.andi %0, %1 : i1
    %3 = arith.extui %2 : i1 to i32
    %c0_i32_1 = arith.constant 0 : i32
    %4 = arith.cmpi ne, %3, %c0_i32_1 : i32
    scf.if %4 {
      %cst_26 = arith.constant 0.000000e+00 : f32
      %73 = vector.broadcast %cst_26 : f32 to vector<8x1xf32>
      %c0_27 = arith.constant 0 : index
      %c0_28 = arith.constant 0 : index
      %74 = vector.load %arg8[%c0_27, %c0_28] : memref<8x1xf32, #tpu.memory_space<vmem>>, vector<8x1xf32>
      tpu.vector_store %arg8[%c0_27, %c0_28], %73 {strides = array<i32>} : memref<8x1xf32, #tpu.memory_space<vmem>>, vector<8x1xf32>,
      %cst_29 = arith.constant 0.000000e+00 : f32
      %75 = vector.broadcast %cst_29 : f32 to vector<8x1xf32>
      %c0_30 = arith.constant 0 : index
      %c0_31 = arith.constant 0 : index
      %76 = vector.load %arg9[%c0_30, %c0_31] : memref<8x1xf32, #tpu.memory_space<vmem>>, vector<8x1xf32>
      tpu.vector_store %arg9[%c0_30, %c0_31], %75 {strides = array<i32>} : memref<8x1xf32, #tpu.memory_space<vmem>>, vector<8x1xf32>,
    } else {
    }
    %c0 = arith.constant 0 : index
    %c0_2 = arith.constant 0 : index
    %c0_3 = arith.constant 0 : index
    %5 = vector.load %arg2[%c0, %c0_2, %c0_3] : memref<1x8x256xf32, #tpu.memory_space<vmem>>, vector<1x8x256xf32>
    %6 = vector.shape_cast %5 : vector<1x8x256xf32> to vector<8x256xf32>
    %cst = arith.constant dense<0xFF800000> : vector<8xf32>
    %7 = vector.multi_reduction <maximumf>, %6, %cst [1] : vector<8x256xf32> to vector<8xf32>
    %8 = vector.shape_cast %7 : vector<8xf32> to vector<8x1xf32>
    %9 = vector.broadcast %8 : vector<8x1xf32> to vector<8x256xf32>
    %10 = arith.subf %6, %9 : vector<8x256xf32>
    %11 = math.exp %10 : vector<8x256xf32>
    %cst_4 = arith.constant dense<0.000000e+00> : vector<8xf32>
    %12 = vector.multi_reduction <add>, %11, %cst_4 [1] : vector<8x256xf32> to vector<8xf32>
    %13 = vector.shape_cast %12 : vector<8xf32> to vector<8x1xf32>
    %14 = math.log %13 : vector<8x1xf32>
    %15 = vector.broadcast %14 : vector<8x1xf32> to vector<8x256xf32>
    %16 = arith.subf %10, %15 : vector<8x256xf32>
    %cst_5 = arith.constant dense<0.000000e+00> : vector<8xf32>
    %17 = vector.multi_reduction <add>, %16, %cst_5 [1] : vector<8x256xf32> to vector<8xf32>
    %18 = vector.shape_cast %17 : vector<8xf32> to vector<8x1xf32>
    %c8_i32 = arith.constant 8 : i32
    %19 = arith.muli %arg0, %c8_i32 : i32
    %c8_i32_6 = arith.constant 8 : i32
    %20 = arith.muli %arg1, %c8_i32_6 : i32
    %21 = arith.addi %19, %20 : i32
    %22 = tpu.assume_multiple %21, 8 : i32
    %23 = arith.index_cast %22 : i32 to index
    %c0_7 = arith.constant 0 : index
    %24 = vector.load %arg3[%23, %c0_7] : memref<24x1xi32, #tpu.memory_space<vmem>>, vector<8x1xi32>
    %25 = arith.index_cast %22 : i32 to index
    %c0_8 = arith.constant 0 : index
    %26 = vector.load %arg4[%25, %c0_8] : memref<24x1xi32, #tpu.memory_space<vmem>>, vector<8x1xi32>
    %27 = arith.index_cast %22 : i32 to index
    %c0_9 = arith.constant 0 : index
    %28 = vector.load %arg5[%27, %c0_9] : memref<24x1xf32, #tpu.memory_space<vmem>>, vector<8x1xf32>
    %29 = tpu.iota {dimensions = array<i32: 1>} : vector<8x256xi32>
    %30 = vector.broadcast %24 : vector<8x1xi32> to vector<8x256xi32>
    %31 = arith.cmpi eq, %29, %30 : vector<8x256xi32>
    %cst_10 = arith.constant 0.000000e+00 : f32
    %32 = vector.broadcast %cst_10 : f32 to vector<8x256xf32>
    %33 = arith.select %31, %16, %32 : vector<8x256xi1>, vector<8x256xf32>
    %cst_11 = arith.constant dense<0.000000e+00> : vector<8xf32>
    %34 = vector.multi_reduction <add>, %33, %cst_11 [1] : vector<8x256xf32> to vector<8xf32>
    %35 = vector.shape_cast %34 : vector<8xf32> to vector<8x1xf32>
    %36 = vector.broadcast %26 : vector<8x1xi32> to vector<8x256xi32>
    %37 = arith.cmpi eq, %29, %36 : vector<8x256xi32>
    %cst_12 = arith.constant 0.000000e+00 : f32
    %38 = vector.broadcast %cst_12 : f32 to vector<8x256xf32>
    %39 = arith.select %37, %16, %38 : vector<8x256xi1>, vector<8x256xf32>
    %cst_13 = arith.constant dense<0.000000e+00> : vector<8xf32>
    %40 = vector.multi_reduction <add>, %39, %cst_13 [1] : vector<8x256xf32> to vector<8xf32>
    %41 = vector.shape_cast %40 : vector<8xf32> to vector<8x1xf32>
    %42 = arith.mulf %28, %35 : vector<8x1xf32>
    %cst_14 = arith.constant 1.000000e+00 : f32
    %43 = vector.broadcast %cst_14 : f32 to vector<8x1xf32>
    %44 = arith.subf %43, %28 : vector<8x1xf32>
    %45 = arith.mulf %44, %41 : vector<8x1xf32>
    %46 = arith.addf %42, %45 : vector<8x1xf32>
    %cst_15 = arith.constant -0.899999976 : f32
    %47 = vector.broadcast %cst_15 : f32 to vector<8x1xf32>
    %48 = arith.mulf %47, %46 : vector<8x1xf32>
    %cst_16 = arith.constant 3.906250e-04 : f32
    %49 = vector.broadcast %cst_16 : f32 to vector<8x1xf32>
    %50 = arith.mulf %49, %18 : vector<8x1xf32>
    %51 = arith.subf %48, %50 : vector<8x1xf32>
    %c3_i32 = arith.constant 3 : i32
    %c0_i32_17 = arith.constant 0 : i32
    %52 = arith.cmpi eq, %c3_i32, %c0_i32_17 : i32
    %c1_i32 = arith.constant 1 : i32
    %53 = arith.select %52, %c1_i32, %c3_i32 : i32
    %54 = arith.remsi %arg0, %53 : i32
    %c0_i32_18 = arith.constant 0 : i32
    %55 = arith.cmpi ne, %54, %c0_i32_18 : i32
    %c0_i32_19 = arith.constant 0 : i32
    %56 = arith.cmpi slt, %54, %c0_i32_19 : i32
    %c0_i32_20 = arith.constant 0 : i32
    %57 = arith.cmpi slt, %53, %c0_i32_20 : i32
    %58 = arith.xori %56, %57 : i1
    %59 = arith.andi %58, %55 : i1
    %60 = arith.addi %54, %53 : i32
    %61 = arith.select %59, %60, %54 : i32
    %c1_i32_21 = arith.constant 1 : i32
    %62 = arith.cmpi eq, %61, %c1_i32_21 : i32
    %63 = arith.extui %62 : i1 to i32
    %c0_i32_22 = arith.constant 0 : i32
    %64 = arith.cmpi ne, %63, %c0_i32_22 : i32
    scf.if %64 {
      %c0_26 = arith.constant 0 : index
      %c0_27 = arith.constant 0 : index
      %73 = vector.load %arg9[%c0_26, %c0_27] : memref<8x1xf32, #tpu.memory_space<vmem>>, vector<8x1xf32>
      %74 = arith.addf %73, %51 : vector<8x1xf32>
      %c0_28 = arith.constant 0 : index
      %c0_29 = arith.constant 0 : index
      %75 = vector.load %arg9[%c0_28, %c0_29] : memref<8x1xf32, #tpu.memory_space<vmem>>, vector<8x1xf32>
      tpu.vector_store %arg9[%c0_28, %c0_29], %74 {strides = array<i32>} : memref<8x1xf32, #tpu.memory_space<vmem>>, vector<8x1xf32>,
    } else {
    }
    %true = arith.constant true
    %65 = arith.xori %62, %true : i1
    %66 = arith.extui %65 : i1 to i32
    %c0_i32_23 = arith.constant 0 : i32
    %67 = arith.cmpi ne, %66, %c0_i32_23 : i32
    scf.if %67 {
      %c0_26 = arith.constant 0 : index
      %c0_27 = arith.constant 0 : index
      %73 = vector.load %arg8[%c0_26, %c0_27] : memref<8x1xf32, #tpu.memory_space<vmem>>, vector<8x1xf32>
      %74 = arith.addf %73, %51 : vector<8x1xf32>
      %c0_28 = arith.constant 0 : index
      %c0_29 = arith.constant 0 : index
      %75 = vector.load %arg8[%c0_28, %c0_29] : memref<8x1xf32, #tpu.memory_space<vmem>>, vector<8x1xf32>
      tpu.vector_store %arg8[%c0_28, %c0_29], %74 {strides = array<i32>} : memref<8x1xf32, #tpu.memory_space<vmem>>, vector<8x1xf32>,
    } else {
    }
    %c2_i32 = arith.constant 2 : i32
    %68 = arith.cmpi eq, %arg0, %c2_i32 : i32
    %c0_i32_24 = arith.constant 0 : i32
    %69 = arith.cmpi eq, %arg1, %c0_i32_24 : i32
    %70 = arith.andi %68, %69 : i1
    %71 = arith.extui %70 : i1 to i32
    %c0_i32_25 = arith.constant 0 : i32
    %72 = arith.cmpi ne, %71, %c0_i32_25 : i32
    scf.if %72 {
      %c0_26 = arith.constant 0 : index
      %c0_27 = arith.constant 0 : index
      %73 = vector.load %arg8[%c0_26, %c0_27] : memref<8x1xf32, #tpu.memory_space<vmem>>, vector<8x1xf32>
      %cst_28 = arith.constant dense<0.000000e+00> : vector<1xf32>
      %74 = vector.multi_reduction <add>, %73, %cst_28 [0] : vector<8x1xf32> to vector<1xf32>
      %75 = vector.shape_cast %74 : vector<1xf32> to vector<1x1xf32>
      %cst_29 = arith.constant 6.250000e-02 : f32
      %76 = vector.broadcast %cst_29 : f32 to vector<1x1xf32>
      %77 = arith.mulf %75, %76 : vector<1x1xf32>
      %c0_30 = arith.constant 0 : index
      %c0_31 = arith.constant 0 : index
      %78 = vector.load %arg6[%c0_30, %c0_31] : memref<1x1xf32, #tpu.memory_space<vmem>>, vector<1x1xf32>
      tpu.vector_store %arg6[%c0_30, %c0_31], %77 {strides = array<i32>} : memref<1x1xf32, #tpu.memory_space<vmem>>, vector<1x1xf32>,
      %c0_32 = arith.constant 0 : index
      %c0_33 = arith.constant 0 : index
      %79 = vector.load %arg9[%c0_32, %c0_33] : memref<8x1xf32, #tpu.memory_space<vmem>>, vector<8x1xf32>
      %cst_34 = arith.constant dense<0.000000e+00> : vector<1xf32>
      %80 = vector.multi_reduction <add>, %79, %cst_34 [0] : vector<8x1xf32> to vector<1xf32>
      %81 = vector.shape_cast %80 : vector<1xf32> to vector<1x1xf32>
      %cst_35 = arith.constant 1.250000e-01 : f32
      %82 = vector.broadcast %cst_35 : f32 to vector<1x1xf32>
      %83 = arith.mulf %81, %82 : vector<1x1xf32>
      %c0_36 = arith.constant 0 : index
      %c0_37 = arith.constant 0 : index
      %84 = vector.load %arg7[%c0_36, %c0_37] : memref<1x1xf32, #tpu.memory_space<vmem>>, vector<1x1xf32>
      tpu.vector_store %arg7[%c0_36, %c0_37], %83 {strides = array<i32>} : memref<1x1xf32, #tpu.memory_space<vmem>>, vector<1x1xf32>,
    } else {
    }
    return
  }
  func.func @transform_0(%arg0: i32, %arg1: i32) -> (i32, i32, i32) {
    %c0_i32 = arith.constant 0 : i32
    %c0_i32_0 = arith.constant 0 : i32
    return %arg0, %arg1, %c0_i32 : i32, i32, i32
  }
  func.func @transform_1(%arg0: i32, %arg1: i32) -> (i32, i32) {
    %c0_i32 = arith.constant 0 : i32
    %c0_i32_0 = arith.constant 0 : i32
    %c0_i32_1 = arith.constant 0 : i32
    return %c0_i32, %c0_i32_0 : i32, i32
  }
  func.func @transform_2(%arg0: i32, %arg1: i32) -> (i32, i32) {
    %c0_i32 = arith.constant 0 : i32
    %c0_i32_0 = arith.constant 0 : i32
    %c0_i32_1 = arith.constant 0 : i32
    return %c0_i32, %c0_i32_0 : i32, i32
  }
  func.func @transform_3(%arg0: i32, %arg1: i32) -> (i32, i32) {
    %c0_i32 = arith.constant 0 : i32
    %c0_i32_0 = arith.constant 0 : i32
    %c0_i32_1 = arith.constant 0 : i32
    return %c0_i32, %c0_i32_0 : i32, i32
  }
  func.func @transform_4(%arg0: i32, %arg1: i32) -> (i32, i32) {
    %c0_i32 = arith.constant 0 : i32
    %c0_i32_0 = arith.constant 0 : i32
    %c0_i32_1 = arith.constant 0 : i32
    return %c0_i32, %c0_i32_0 : i32, i32
  }
  func.func @transform_5(%arg0: i32, %arg1: i32) -> (i32, i32) {
    %c0_i32 = arith.constant 0 : i32
    %c0_i32_0 = arith.constant 0 : i32
    %c0_i32_1 = arith.constant 0 : i32
    return %c0_i32, %c0_i32_0 : i32, i32
  }
}

</mosaic_0001>

<bundles_post_ra>
// kernel: tpu_custom_call.1
= control target key start
LH: loop header
LB: loop body
LE: loop exit
PB: predicated region body
PF: predicated region fallthrough
CT: control target
= control target key end

     0   :  { %11 = vsyncpa [#allocation5], 0  ;;  %s730_s0 = inlined_call_operand.vmem [shape: f32[3,8,256], index: 0, kind: input, shape index: {}]   ;;  %s731_s1 = inlined_call_operand.vmem [shape: s32[24,1], index: 1, kind: input, shape index: {}]   ;;  %s732_s2 = inlined_call_operand.vmem [shape: s32[24,1], index: 2, kind: input, shape index: {}]   ;;  %s733_s3 = inlined_call_operand.vmem [shape: f32[24,1], index: 3, kind: input, shape index: {}]   ;;  %s734_s4 = inlined_call_operand.hbm [shape: f32[1,1], index: 4, kind: output, shape index: {0}]   ;;  %s735_s5 = inlined_call_operand.hbm [shape: f32[1,1], index: 5, kind: output, shape index: {1}]  }
   0x1   :  { %12 = vsyncpa [#allocation7], 0  ;;  %s647_s18 = smov 0   ;;  %s649_s19 = smov 0  }
   0x2   :  { %s651_s20 = smov 0  }
   0x3 LB: > { %s459_s21 = sadd.s32 4294967295, %s611_s20   ;;  %s30_s22 = sadd.s32 1, %s607_s19  ;;  %s611_s20 = sphi %s651_s20, %s18_s20   ;;  %s607_s19 = sphi %s649_s19, %s738_s19   ;;  %s603_s18 = sphi %s647_s18, %s737_s18  }
   0x4   : > { %p32_p0 = scmp.ge.s32.totalorder %s30_s22, 3  ;;  %p462_p1 = scmp.ge.s32.totalorder %s611_s20, 1 }
   0x5   : > { %p200_p2 = scmp.lt.s32.totalorder %s611_s20, 4 }
   0x6   : > { %s740_s22 = smov (%p32_p0, %s30_s22), 0 }
   0x7   : > { %p201_p3 = pnand %p462_p1, %p200_p2 }
   0x8   : > { %p227_p4 = scmp.lt.s32.totalorder (!%p201_p3), %s603_s18, 2  ;;  %p236_p5 = scmp.eq.s32.totalorder (!%p201_p3), %s603_s18, 0 }
   0x9   : > { %204 = sbr.rel (%p201_p3) target bundleno = 552 (0x228), region = 36 }
   0xe   : > { %s228_s23 = scalar_select %p227_p4, %s603_s18, 2  ;;  %vm242_vm0 = vcmask (%p236_p5), 7168   ;;  %v613_v0 = vmov (%p236_p5), 0.0  }
   0xf   : > { %241 = sbr.rel (!%p236_p5) target bundleno = 20 (0x14), region = 40  ;;  %243 = vst.msk [vmem:[#allocation2] sm:$0xff] (%p236_p5), %vm242_vm0, %v613_v0  ;;  %244 = vst.msk [vmem:[#allocation3] sm:$0xff] (%p236_p5), %vm242_vm0, %v613_v0 }
  0x10   : > { %s479_s24 = sshll.u32 %s228_s23, 4 }
  0x11   : > { %s235_s27 = scalar_lea.vmem %s730_s0, %s479_s24 }
  0x14 PF: > { %v245_v1 = vld [vmem:[%s235_s27] sm:$0xff]  ;;  %v246_v2 = vld [vmem:[%s235_s27 + $0x8] sm:$0xff]  ;;  %s675_s28 = sshll.u32 %s603_s18, 3  ;;  %v614_v4 = vmov 0   ;;  %v275_v16 = vlaneseq  ;;  %s306_s10 = ssub.s32 0, %s603_s18 }
  0x15   : > { %v247_v3 = vmax.f32 %v245_v1, %v246_v2  ;;  %523 = vset.pattern.permute.xlu1 %v614_v4  ;;  %s269_s6 = scalar_lea.vmem %s731_s1, %s675_s28  ;;  %s271_s9 = scalar_lea.vmem %s732_s2, %s675_s28  ;;  %524 = vset.pattern.permute.xlu0 %v614_v4 }
  0x16   : > { %v270_v5 = vld [vmem:[%s269_s6] sm:$0xff]  ;;  %v276_v18 = vand.u32 127, %v275_v16  ;;  %s467_s11 = smin.u32 %s603_s18, %s306_s10  ;;  %p305_p6 = scmp.lt.s32.totalorder %s603_s18, 0 }
  0x17   : > { %248 = vmax.xlane.f32.xlu0 %v247_v3  ;;  %279 = vperm.xlu1 %523, %v270_v5   ;;  %v272_v6 = vld [vmem:[%s271_s9] sm:$0xff]  ;;  %525 = sdivrem.u32 %s467_s11, 3  ;;  %s273_s17 = scalar_lea.vmem %s733_s3, %s675_s28 }
  0x18   : > { %v277_v20 = vadd.s32 128, %v276_v18  ;;  %v274_v32 = vld [vmem:[%s273_s17] sm:$0xff] }
  0x19   : > { %v299_v33 = vsub.f32 1.0, %v274_v32 }
  0x1b   : > { %289 = vperm.xlu1 %523, %v272_v6  }
  0x20   : > { %s526_s12 = spop.drf %525 }
  0x21   : > { %s310_s13 = ssub.s32 0, %s526_s12 }
  0x22   : > { %s742_s13 = smov (!%p305_p6, %s310_s13), %s526_s12 }
  0x23   : > { %p469_p7 = scmp.lt.s32.totalorder %s742_s13, 0  ;;  %s316_s14 = sadd.s32 3, %s742_s13 }
  0x25   : > { %s744_s14 = smov (!%p469_p7, %s316_s14), %s742_s13 }
  0x26   : > { %p470_p8 = scmp.ne.s32.totalorder %s744_s14, 1 }
  0x92   : > { %v280_v17 = vpop.permute.xlu1 %279 }
  0x93   : > { %vm281_vm1 = vcmp.eq.s32.totalorder %v276_v18, %v280_v17  ;;  %vm282_vm2 = vcmp.eq.s32.totalorder %v277_v20, %v280_v17 }
  0x96   : > { %v290_v22 = vpop.permute.xlu1 %289 }
  0x97   : > { %vm291_vm3 = vcmp.eq.s32.totalorder %v276_v18, %v290_v22  ;;  %vm292_vm4 = vcmp.eq.s32.totalorder %v277_v20, %v290_v22 }
  0xa0   : > { %v249_v7 = vpop.xlane.xlu0 %248 }
  0xa1   : > { %v250_v8 = vsub.f32 %v245_v1, %v249_v7  ;;  %v251_v9 = vsub.f32 %v246_v2, %v249_v7 }
  0xa3   : > { %v252_v10 = vmul.f32 1.442695, %v250_v8  ;;  %v254_v11 = vmul.f32 1.442695, %v251_v9 }
  0xa5   : > { %527 = vpow2.f32 %v252_v10 }
  0xa6   : > { %529 = vpow2.f32 %v254_v11 }
  0xb2   : > { %v528_v12 = vpop.eup %527 }
  0xb3   : > { %v530_v13 = vpop.eup %529 }
  0xb4   : > { %v256_v14 = vadd.f32 %v530_v13, %v528_v12 }
  0xb6   : > { %257 = vadd.xlane.f32.xlu0 %v256_v14 }
 0x13f   : > { %v258_v15 = vpop.xlane.xlu0 %257 }
 0x140   : > { %531 = vlog2.f32 %v258_v15 }
 0x14d   : > { %v532_v19 = vpop.eup %531 }
 0x14e   : > { %v260_v21 = vmul.f32 0.6931472, %v532_v19 }
 0x150   : > { %v261_v23 = vsub.f32 %v250_v8, %v260_v21  ;;  %v262_v24 = vsub.f32 %v251_v9, %v260_v21 }
 0x152   : > { %v293_v25 = vsel %vm291_vm3, %v261_v23, 0.0  ;;  %v294_v26 = vsel %vm292_vm4, %v262_v24, 0.0  ;;  %v283_v27 = vsel %vm281_vm1, %v261_v23, 0.0  ;;  %v284_v28 = vsel %vm282_vm2, %v262_v24, 0.0 }
 0x153   : > { %v295_v29 = vadd.f32 %v294_v26, %v293_v25  ;;  %v285_v30 = vadd.f32 %v284_v28, %v283_v27  ;;  %v263_v31 = vadd.f32 %v262_v24, %v261_v23 }
 0x155   : > { %296 = vadd.xlane.f32.xlu1 %v295_v29  ;;  %286 = vadd.xlane.f32.xlu0 %v285_v30 }
 0x159   : > { %264 = vadd.xlane.f32.xlu0 %v263_v31 }
 0x1de   : > { %v297_v34 = vpop.xlane.xlu1 %296  ;;  %v287_v35 = vpop.xlane.xlu0 %286 }
 0x1df   : > { %v300_v36 = vmul.f32 %v299_v33, %v297_v34  ;;  %v298_v37 = vmul.f32 %v287_v35, %v274_v32 }
 0x1e1   : > { %v301_v38 = vadd.f32 %v300_v36, %v298_v37  ;;  %321 = sbr.rel (%p470_p8) target bundleno = 490 (0x1ea), region = 44 }
 0x1e2   : > { %v265_v39 = vpop.xlane.xlu0 %264 }
 0x1e3   : > { %v302_v40 = vmul.f32 -0.9, %v301_v38  ;;  %v303_v41 = vmul.f32 0.000390625, %v265_v39 }
 0x1e5   : > { %v304_v42 = vsub.f32 %v302_v40, %v303_v41 }
 0x1e6   : > { %v322_v43 = vld [vmem:[#allocation3] sm:$0xff]  ;;  %vm324_vm5 = vcmask 7168  }
 0x1e7   : > { %v323_v44 = vadd.f32 %v322_v43, %v304_v42 }
 0x1e9   : > { %325 = vst.msk [vmem:[#allocation3] sm:$0xff] %vm324_vm5, %v323_v44 }
 0x1ea PF: > { %p471_p9 = scmp.eq.s32.totalorder %s744_s14, 1 }
 0x1ec   : > { %329 = sbr.rel (%p471_p9) target bundleno = 501 (0x1f5), region = 48 }
 0x1f1   : > { %v330_v45 = vld [vmem:[#allocation2] sm:$0xff]  ;;  %vm332_vm6 = vcmask 7168  }
 0x1f2   : > { %v331_v46 = vadd.f32 %v330_v45, %v304_v42 }
 0x1f4   : > { %333 = vst.msk [vmem:[#allocation2] sm:$0xff] %vm332_vm6, %v331_v46 }
 0x1f5 PF: > { %p334_p10 = scmp.eq.s32.totalorder %s603_s18, 2 }
 0x1f6   : > { %vm340_vm7 = vcmask (%p334_p10), 7168   ;;  %v351_v48 = vld [vmem:[#allocation3] sm:$0xff] (%p334_p10)  ;;  %vm349_vm8 = vcmask (%p334_p10), 0  }
 0x1f7   : > { %338 = sbr.rel (!%p334_p10) target bundleno = 524 (0x20c), region = 52  ;;  %v352_v50 = vsel (%p334_p10), %vm340_vm7, %v351_v48, 0.0 }
 0x1f8   : > { %v353_v52 = vrot.slane (%p334_p10), %v352_v50, 4 }
 0x1fa   : > { %v354_v54 = vadd.f32 (%p334_p10), %v353_v52, %v352_v50 }
 0x1fb   : > { %v339_v47 = vld [vmem:[#allocation2] sm:$0xff] (%p334_p10) }
 0x1fc   : > { %v341_v49 = vsel %vm340_vm7, %v339_v47, 0.0  ;;  %v355_v56 = vrot.slane %v354_v54, 2 }
 0x1fd   : > { %v342_v51 = vrot.slane %v341_v49, 4 }
 0x1fe   : > { %v356_v58 = vadd.f32 %v355_v56, %v354_v54 }
 0x1ff   : > { %v343_v53 = vadd.f32 %v342_v51, %v341_v49 }
 0x200   : > { %v357_v60 = vrot.slane %v356_v58, 1 }
 0x201   : > { %v344_v55 = vrot.slane %v343_v53, 2 }
 0x202   : > { %v358_v62 = vadd.f32 %v357_v60, %v356_v58 }
 0x203   : > { %v345_v57 = vadd.f32 %v344_v55, %v343_v53 }
 0x204   : > { %v359_v0 = vmul.f32 0.125, %v358_v62 }
 0x205   : > { %v346_v59 = vrot.slane %v345_v57, 1 }
 0x206   : > { %360 = vst.msk [vmem:[#allocation6] sm:$0x1] %vm349_vm8, %v359_v0 }
 0x207   : > { %v347_v61 = vadd.f32 %v346_v59, %v345_v57 }
 0x209   : > { %v348_v63 = vmul.f32 0.0625, %v347_v61 }
 0x20b   : > { %350 = vst.msk [vmem:[#allocation4] sm:$0x1] %vm349_vm8, %v348_v63 }
 0x20c PF: > { %p695_p11 = scmp.eq.s32.totalorder %s459_s21, 2  ;;  %s615_s23 = smov [#allocation4]  }
 0x20d   : > { %s368_s24 = sshll.u32 %s615_s23, 4  ;;  %s616_s25 = smov [#allocation6]   ;;  %s369_s24 = int_to_ptr.vmem [resolvable:$true] %s368_s24 }
 0x20e   : > { %s379_s26 = sshll.u32 %s616_s25, 4  ;;  %s533_s27 = scalar_lea.vmem %s369_s24, 16  ;;  %s380_s26 = int_to_ptr.vmem [resolvable:$true] %s379_s26 }
 0x20f   : > { %p534_p12 = scmp.ne.s32.totalorder %s369_s24, %s533_s27  ;;  %s539_s28 = scalar_lea.vmem %s369_s24, 32 }
 0x210   : > { %p540_p1 = scmp.lt.s32.totalorder %s369_s24, %s369_s24  ;;  %p541_p2 = scmp.lt.s32.totalorder %s539_s28, %s533_s27 }
 0x211   : > { %p535_p13 = pnand %p534_p12, %p695_p11 }
 0x212   : > { %p542_p3 = por %p541_p2, %p540_p1 }
 0x213   : > { %p536_p0 = pneg %p535_p13 }
 0x215   : > { %p543_p4 = pnand %p542_p3, %p536_p0 }
 0x217   : > { %546 = shalt.err (!%p543_p4)
}
 0x218   : > { %483 = dma.vmem_to_hbm [thread:$0]  (%p695_p11), %s369_s24, 16, %s734_s4, [#allocation5]  }
 0x219   : > { %s557_s30 = scalar_lea.vmem %s380_s26, 16  ;;  %s563_s6 = scalar_lea.vmem %s380_s26, 32 }
 0x21a   : > { %p558_p5 = scmp.ne.s32.totalorder %s380_s26, %s557_s30  ;;  %p564_p8 = scmp.lt.s32.totalorder %s380_s26, %s380_s26 }
 0x21b   : > { %p565_p9 = scmp.lt.s32.totalorder %s563_s6, %s557_s30 }
 0x21c   : > { %p559_p6 = pnand %p558_p5, %p695_p11 }
 0x21d   : > { %p566_p10 = por %p565_p9, %p564_p8 }
 0x21e   : > { %p560_p7 = pneg %p559_p6 }
 0x220   : > { %p567_p12 = pnand %p566_p10, %p560_p7 }
 0x222   : > { %570 = shalt.err (!%p567_p12)
}
 0x223   : > { %485 = dma.vmem_to_hbm [thread:$0]  (%p695_p11), %s380_s26, 16, %s735_s5, [#allocation7]  }
 0x224   : > { %594 = dma.done.wait (%p695_p11), [#allocation5], 16  }
 0x225   : > { %596 = vsyncadd (%p695_p11), [#allocation5], 4294967280 }
 0x226   : > { %598 = dma.done.wait (%p695_p11), [#allocation7], 16  }
 0x227   : > { %600 = vsyncadd (%p695_p11), [#allocation7], 4294967280 }
 0x228 PF: > { %s18_s20 = sadd.s32 1, %s611_s20   ;;  %s737_s18 = smov %s607_s19 }
 0x229   : > { %p15_p13 = scmp.ge.s32.totalorder %s18_s20, 5   ;;  %s738_s19 = smov %s740_s22 }
 0x22b   :  { %17 = sbr.rel (!%p15_p13) target bundleno = 3 (0x3), region = 90 }
 0x230   :  { %396 = vsyncpa [#allocation5], 1 }
 0x231   :  { %398 = vsyncpa [#allocation5 + $0x1], 1 }
 0x232   :  { %399 = vsyncpa [#allocation7], 1 }

</bundles_post_ra>
